<compile_context>
chip_gen: v7x
topology: tpu7x:2x2x1
jax: 0.10.0
libtpu: 0.0.40
codegen_flags: <defaults>
</compile_context>

<pallas_src>
import functools

import jax
import jax.numpy as jnp
from jax.experimental import pallas as pl
from jax.experimental.pallas import tpu as pltpu


def _round_up(a, b):
    return ((a + b - 1) // b) * b


def _tpu_config():
    """Generation-dependent knobs: (n_cores, vmem_limit_bytes, target_block_bytes)."""
    kind = ""
    try:
        kind = jax.devices()[0].device_kind.lower()
    except Exception:
        pass
    is_v7 = ("v7" in kind) or ("tpu7" in kind) or ("tpu 7" in kind)
    if is_v7:
        # 2 TensorCores/chip, 64 MiB VMEM per core: conservative blocks.
        n_cores, vmem_limit, block_bytes = 2, 32 << 20, 2 << 20
    else:
        # v5e / v6e: 1 TC, 128 MiB VMEM: bigger blocks + limit are safe.
        n_cores, vmem_limit, block_bytes = 1, 64 << 20, 4 << 20
    try:
        # Refine from the actual hardware if the query is available; leave half
        # of physical VMEM to the compiler's own scratch / pipelining buffers.
        phys = int(getattr(pltpu.get_tpu_info(), "vmem_capacity_bytes", 0))
        if phys:
            vmem_limit = min(vmem_limit, max(16 << 20, phys // 2))
    except Exception:
        pass
    return n_cores, vmem_limit, block_bytes


def focal_cosine_kernel(x_ref, t_ref, out_ref, iota_ref, acc_ref, *,
                        alpha, gamma, xent, n_valid, tiles_per_core):
    c = pl.program_id(0)          # core-split axis (CORE_PARALLEL on v7x)
    i = pl.program_id(1)          # batch-tile axis ("arbitrary" reduction)

    @pl.when(i == 0)
    def _init():
        # (1, C) column-index iota built once per core and re-read from VMEM
        # (idle vld slots) instead of regenerating on the VALU every step.
        iota_ref[...] = jax.lax.broadcasted_iota(jnp.int32, iota_ref.shape, 1)
        acc_ref[...] = jnp.zeros_like(acc_ref)

    x = x_ref[...].astype(jnp.float32)      # (TN, C); DMA'd in its native dtype
    t = t_ref[...]                          # (TN, 1) int32
    tn = x.shape[0]

    # Mask rows that exist only because of padding.
    row = jax.lax.broadcasted_iota(jnp.int32, (tn, 1), 0)
    global_row = (c * tiles_per_core + i) * tn + row
    valid = (global_row < n_valid).astype(jnp.float32)              # (TN, 1)

    # Fused cosine / cross-entropy target path: one rsqrt-based normalization;
    # both the cosine similarity and the CE target logit read off x_n directly.
    sumsq = jnp.sum(x * x, axis=-1, keepdims=True)                  # (TN, 1)
    inv_norm = jax.lax.rsqrt(jnp.maximum(sumsq, 1e-24))             # 1/max(||x||, 1e-12)
    x_n = x * inv_norm                                              # (TN, C)

    # Target logit of the normalized row via masked reduce (no one-hot).
    tmask = iota_ref[...] == t                                      # (1,C)==(TN,1) -> (TN,C)
    target_logit_n = jnp.sum(jnp.where(tmask, x_n, 0.0),
                             axis=-1, keepdims=True)                # (TN, 1)

    # cos(x, one_hot(t)) == x_n[t] since ||one_hot|| == 1.  NOTE: PyTorch clamps
    # the cosine denominator at 1e-8 vs F.normalize's 1e-12; the unified clamp
    # only diverges for degenerate all-zero rows.
    cos_contrib = 1.0 - target_logit_n

    # Cross-entropy of the normalized row.  x_n in [-1, 1] => exp cannot
    # overflow, so the max-subtraction pass is skipped.
    lse = jnp.log(jnp.sum(jnp.exp(x_n), axis=-1, keepdims=True))
    cent = lse - target_logit_n                                     # (TN, 1)

    # Focal weighting; small-integer gamma avoids the pow -> exp/log path.
    pt = jnp.exp(-cent)
    one_minus_pt = 1.0 - pt
    g = float(gamma)
    if g.is_integer() and 0 <= g <= 8:
        w = jnp.ones_like(one_minus_pt)
        for _ in range(int(g)):
            w = w * one_minus_pt
    else:
        # TODO(synk): non-integer gamma uses pow (exp/log); pow(0, gamma) when
        # cent == 0 mirrors the PyTorch edge case.
        w = one_minus_pt ** gamma
    focal_contrib = alpha * w * cent

    # Single fused accumulator: mean(cos) + xent*mean(focal) == mean(cos_i +
    # xent*focal_i), so one (TN,1)->(1,1) reduce + RMW per step instead of two.
    combined = (cos_contrib + xent * focal_contrib) * valid
    acc_ref[...] += jnp.sum(combined, keepdims=True)

    @pl.when(i == pl.num_programs(1) - 1)
    def _finalize():
        partial = acc_ref[...] * jnp.float32(1.0 / n_valid)
        # Lane-dense (8, 128) block write; wrapper reads row 0 of each core block.
        out_ref[...] = jnp.broadcast_to(partial, (8, 128))


def focal_cosine_loss(x, target, alpha=1.0, gamma=2.0, xent=0.1,
                      max_block_bytes=None):
    """x: (N, C) logits (any float dtype); target: (N,) int class indices."""
    N, C = x.shape
    n_cores, vmem_limit, block_bytes = _tpu_config()
    if max_block_bytes is not None:
        block_bytes = int(max_block_bytes)
    itemsize = jnp.dtype(x.dtype).itemsize

    # Batch tile: multiple of 8 sublanes.  The DMA block is sized by the *input*
    # itemsize (bf16 gets twice the rows of f32 for the same bytes) and capped
    # so the ~5 live (tn, C) f32 temporaries plus the double-buffered input
    # block stay inside the scoped VMEM budget.
    rows_per_core = -(-N // n_cores)
    dma_cap = max(8, (block_bytes // (C * itemsize)) // 8 * 8)
    budget = (vmem_limit * 3) // 4
    denom = C * (5 * 4 + 2 * itemsize)
    assert 8 * denom <= budget, (
        f"num_classes={C} too large for the single-(tn, C)-block kernel; "
        "needs a C-tiled / online-LSE variant")
    # TODO(synk): add a C-tiling grid axis with an online LSE for very large C
    # instead of the assert above.
    ws_cap = max(8, (budget // denom) // 8 * 8)
    tn = min(dma_cap, ws_cap, _round_up(rows_per_core, 8))
    tiles_per_core = -(-rows_per_core // tn)
    n_pad = n_cores * tiles_per_core * tn

    t2 = target.astype(jnp.int32).reshape(N, 1)
    if n_pad != N:
        x = jnp.pad(x, ((0, n_pad - N), (0, 0)))
        t2 = jnp.pad(t2, ((0, n_pad - N), (0, 0)))

    kernel = functools.partial(
        focal_cosine_kernel, alpha=float(alpha), gamma=float(gamma),
        xent=float(xent), n_valid=N, tiles_per_core=tiles_per_core)

    def build(semantics):
        return pl.pallas_call(
            kernel,
            out_shape=jax.ShapeDtypeStruct((n_cores * 8, 128), jnp.float32),
            grid_spec=pltpu.PrefetchScalarGridSpec(
                num_scalar_prefetch=0,
                grid=(n_cores, tiles_per_core),
                in_specs=[
                    # TODO(synk): bump to pipeline_mode=pl.Buffered(3) on v7x if
                    # xprof shows exposed DMA at tile boundaries.
                    pl.BlockSpec((tn, C), lambda c, i: (c * tiles_per_core + i, 0)),
                    pl.BlockSpec((tn, 1), lambda c, i: (c * tiles_per_core + i, 0)),
                ],
                out_specs=pl.BlockSpec((8, 128), lambda c, i: (c, 0)),
                scratch_shapes=[pltpu.VMEM((1, C), jnp.int32),
                                pltpu.VMEM((1, 1), jnp.float32)],
            ),
            compiler_params=pltpu.CompilerParams(
                dimension_semantics=semantics,
                vmem_limit_bytes=vmem_limit,
            ),
        )

    if n_cores > 1:
        # A real megacore split needs CORE_PARALLEL (plain "parallel" does not
        # change codegen); fall back gracefully if this generation rejects it.
        try:
            out = build((pltpu.CORE_PARALLEL, pltpu.ARBITRARY))(x, t2)
        except Exception:
            out = build(("parallel", "arbitrary"))(x, t2)
    else:
        out = build(("arbitrary", "arbitrary"))(x, t2)

    # One (8, 128) partial block per core; row 0 of each block carries its value.
    return jnp.sum(out[0::8, 0])


def _reference(x, target, alpha=1.0, gamma=2.0, xent=0.1):
    """Pure-JAX reference mirroring the PyTorch module."""
    x = x.astype(jnp.float32)
    C = x.shape[-1]
    onehot = jax.nn.one_hot(target, C, dtype=jnp.float32)
    norm = jnp.sqrt(jnp.sum(x * x, axis=-1, keepdims=True))
    tgt_logit = jnp.sum(x * onehot, axis=-1, keepdims=True)
    cosine_loss = jnp.mean(1.0 - tgt_logit / jnp.maximum(norm, 1e-8))
    x_n = x / jnp.maximum(norm, 1e-12)
    logp = jax.nn.log_softmax(x_n, axis=-1)
    cent = -jnp.take_along_axis(logp, target[:, None], axis=-1)[:, 0]
    pt = jnp.exp(-cent)
    focal = alpha * (1.0 - pt) ** gamma * cent
    return cosine_loss + xent * jnp.mean(focal)


if __name__ == "__main__":
    k1, k2, k3, k4 = jax.random.split(jax.random.PRNGKey(0), 4)

    # Case 1: small f32, integer gamma.
    x1 = jax.random.normal(k1, (8, 32), dtype=jnp.float32)
    t1 = jax.random.randint(k2, (8,), 0, 32, dtype=jnp.int32)
    out1 = jax.block_until_ready(
        focal_cosine_loss(x1, t1, alpha=1.0, gamma=2.0, xent=0.1))
    ref1 = _reference(x1, t1, alpha=1.0, gamma=2.0, xent=0.1)
    assert jnp.allclose(out1, ref1, atol=2e-5, rtol=2e-5), (out1, ref1)

    # Case 2: bf16 input, non-multiple-of-128 class dim, ragged batch, multiple
    # grid tiles (tiny max_block_bytes forces tn=8), non-integer gamma.
    x2 = jax.random.normal(k3, (23, 100), dtype=jnp.float32).astype(jnp.bfloat16)
    t2 = jax.random.randint(k4, (23,), 0, 100, dtype=jnp.int32)
    out2 = jax.block_until_ready(
        focal_cosine_loss(x2, t2, alpha=0.5, gamma=1.5, xent=0.2,
                          max_block_bytes=8 * 100 * 2))
    ref2 = _reference(x2, t2, alpha=0.5, gamma=1.5, xent=0.2)
    assert jnp.allclose(out2, ref2, atol=1e-4, rtol=1e-3), (out2, ref2)

    print("KERNEL_OK")
</pallas_src>

<mosaic_0001>
module attributes {stable_mosaic.version = 11 : i64} {
  func.func @focal_cosine_kernel(%arg0: i32, %arg1: i32, %arg2: memref<8x32xf32, #tpu.memory_space<vmem>>, %arg3: memref<8x1xi32, #tpu.memory_space<vmem>>, %arg4: memref<8x128xf32, #tpu.memory_space<vmem>>, %arg5: memref<1x32xi32, #tpu.memory_space<vmem>>, %arg6: memref<1x1xf32, #tpu.memory_space<vmem>>) attributes {dimension_semantics = [#tpu.dimension_semantics<arbitrary>, #tpu.dimension_semantics<arbitrary>], iteration_bounds = array<i64: 1, 1>, scalar_prefetch = 0 : i64, scratch_operands = 2 : i64, tpu.core_type = #tpu.core_type<tc>, window_params = [{transform_indices = @transform_0, window_bounds = array<i64: 8, 32>}, {transform_indices = @transform_1, window_bounds = array<i64: 8, 1>}, {transform_indices = @transform_2, window_bounds = array<i64: 8, 128>}]} {
    %c0_i32 = arith.constant 0 : i32
    %0 = arith.cmpi eq, %arg1, %c0_i32 : i32
    %1 = arith.extui %0 : i1 to i32
    %c0_i32_0 = arith.constant 0 : i32
    %2 = arith.cmpi ne, %1, %c0_i32_0 : i32
    scf.if %2 {
      %64 = tpu.iota {dimensions = array<i32: 1>} : vector<1x32xi32>
      %c0_24 = arith.constant 0 : index
      %c0_25 = arith.constant 0 : index
      %65 = vector.load %arg5[%c0_24, %c0_25] : memref<1x32xi32, #tpu.memory_space<vmem>>, vector<1x32xi32>
      tpu.vector_store %arg5[%c0_24, %c0_25], %64 {strides = array<i32>} : memref<1x32xi32, #tpu.memory_space<vmem>>, vector<1x32xi32>,
      %cst_26 = arith.constant 0.000000e+00 : f32
      %66 = vector.broadcast %cst_26 : f32 to vector<1x1xf32>
      %c0_27 = arith.constant 0 : index
      %c0_28 = arith.constant 0 : index
      %67 = vector.load %arg6[%c0_27, %c0_28] : memref<1x1xf32, #tpu.memory_space<vmem>>, vector<1x1xf32>
      tpu.vector_store %arg6[%c0_27, %c0_28], %66 {strides = array<i32>} : memref<1x1xf32, #tpu.memory_space<vmem>>, vector<1x1xf32>,
    } else {
    }
    %c0 = arith.constant 0 : index
    %c0_1 = arith.constant 0 : index
    %3 = vector.load %arg2[%c0, %c0_1] : memref<8x32xf32, #tpu.memory_space<vmem>>, vector<8x32xf32>
    %c0_2 = arith.constant 0 : index
    %c0_3 = arith.constant 0 : index
    %4 = vector.load %arg3[%c0_2, %c0_3] : memref<8x1xi32, #tpu.memory_space<vmem>>, vector<8x1xi32>
    %5 = tpu.iota {dimensions = array<i32: 0>} : vector<8x1xi32>
    %c1_i32 = arith.constant 1 : i32
    %6 = arith.muli %arg0, %c1_i32 : i32
    %7 = arith.addi %6, %arg1 : i32
    %c8_i32 = arith.constant 8 : i32
    %8 = arith.muli %7, %c8_i32 : i32
    %9 = vector.broadcast %8 : i32 to vector<8x1xi32>
    %10 = arith.addi %9, %5 : vector<8x1xi32>
    %c8_i32_4 = arith.constant 8 : i32
    %11 = vector.broadcast %c8_i32_4 : i32 to vector<8x1xi32>
    %12 = arith.cmpi slt, %10, %11 : vector<8x1xi32>
    %13 = arith.extui %12 : vector<8x1xi1> to vector<8x1xi32>
    %14 = arith.sitofp %13 : vector<8x1xi32> to vector<8x1xf32>
    %15 = arith.mulf %3, %3 : vector<8x32xf32>
    %cst = arith.constant dense<0.000000e+00> : vector<8xf32>
    %16 = vector.multi_reduction <add>, %15, %cst [1] : vector<8x32xf32> to vector<8xf32>
    %17 = vector.shape_cast %16 : vector<8xf32> to vector<8x1xf32>
    %cst_5 = arith.constant 1.000000e-24 : f32
    %18 = vector.broadcast %cst_5 : f32 to vector<8x1xf32>
    %19 = arith.maximumf %17, %18 : vector<8x1xf32>
    %20 = math.rsqrt %19 : vector<8x1xf32>
    %21 = vector.broadcast %20 : vector<8x1xf32> to vector<8x32xf32>
    %22 = arith.mulf %3, %21 : vector<8x32xf32>
    %c0_6 = arith.constant 0 : index
    %c0_7 = arith.constant 0 : index
    %23 = vector.load %arg5[%c0_6, %c0_7] : memref<1x32xi32, #tpu.memory_space<vmem>>, vector<1x32xi32>
    %24 = vector.broadcast %23 : vector<1x32xi32> to vector<8x32xi32>
    %25 = vector.broadcast %4 : vector<8x1xi32> to vector<8x32xi32>
    %26 = arith.cmpi eq, %24, %25 : vector<8x32xi32>
    %cst_8 = arith.constant 0.000000e+00 : f32
    %27 = vector.broadcast %cst_8 : f32 to vector<8x32xf32>
    %28 = arith.select %26, %22, %27 : vector<8x32xi1>, vector<8x32xf32>
    %cst_9 = arith.constant dense<0.000000e+00> : vector<8xf32>
    %29 = vector.multi_reduction <add>, %28, %cst_9 [1] : vector<8x32xf32> to vector<8xf32>
    %30 = vector.shape_cast %29 : vector<8xf32> to vector<8x1xf32>
    %cst_10 = arith.constant 1.000000e+00 : f32
    %31 = vector.broadcast %cst_10 : f32 to vector<8x1xf32>
    %32 = arith.subf %31, %30 : vector<8x1xf32>
    %33 = math.exp %22 : vector<8x32xf32>
    %cst_11 = arith.constant dense<0.000000e+00> : vector<8xf32>
    %34 = vector.multi_reduction <add>, %33, %cst_11 [1] : vector<8x32xf32> to vector<8xf32>
    %35 = vector.shape_cast %34 : vector<8xf32> to vector<8x1xf32>
    %36 = math.log %35 : vector<8x1xf32>
    %37 = arith.subf %36, %30 : vector<8x1xf32>
    %cst_12 = arith.constant 0.000000e+00 : f32
    %38 = vector.broadcast %cst_12 : f32 to vector<8x1xf32>
    %39 = arith.subf %38, %37 : vector<8x1xf32>
    %40 = math.exp %39 : vector<8x1xf32>
    %cst_13 = arith.constant 1.000000e+00 : f32
    %41 = vector.broadcast %cst_13 : f32 to vector<8x1xf32>
    %42 = arith.subf %41, %40 : vector<8x1xf32>
    %cst_14 = arith.constant 1.000000e+00 : f32
    %43 = vector.broadcast %cst_14 : f32 to vector<8x1xf32>
    %44 = arith.mulf %43, %42 : vector<8x1xf32>
    %45 = arith.mulf %44, %42 : vector<8x1xf32>
    %cst_15 = arith.constant 1.000000e+00 : f32
    %46 = vector.broadcast %cst_15 : f32 to vector<8x1xf32>
    %47 = arith.mulf %46, %45 : vector<8x1xf32>
    %48 = arith.mulf %47, %37 : vector<8x1xf32>
    %cst_16 = arith.constant 1.000000e-01 : f32
    %49 = vector.broadcast %cst_16 : f32 to vector<8x1xf32>
    %50 = arith.mulf %49, %48 : vector<8x1xf32>
    %51 = arith.addf %32, %50 : vector<8x1xf32>
    %52 = arith.mulf %51, %14 : vector<8x1xf32>
    %c0_17 = arith.constant 0 : index
    %c0_18 = arith.constant 0 : index
    %53 = vector.load %arg6[%c0_17, %c0_18] : memref<1x1xf32, #tpu.memory_space<vmem>>, vector<1x1xf32>
    %54 = vector.shape_cast %52 : vector<8x1xf32> to vector<1x8x1xf32>
    %cst_19 = arith.constant dense<0.000000e+00> : vector<1xf32>
    %55 = vector.multi_reduction <add>, %54, %cst_19 [1, 2] : vector<1x8x1xf32> to vector<1xf32>
    %56 = vector.shape_cast %55 : vector<1xf32> to vector<1x1x1xf32>
    %57 = vector.extract %56[0, 0, 0] : f32 from vector<1x1x1xf32>
    %58 = vector.broadcast %57 : f32 to vector<1x1xf32>
    %59 = arith.addf %53, %58 : vector<1x1xf32>
    %c0_20 = arith.constant 0 : index
    %c0_21 = arith.constant 0 : index
    %60 = vector.load %arg6[%c0_20, %c0_21] : memref<1x1xf32, #tpu.memory_space<vmem>>, vector<1x1xf32>
    tpu.vector_store %arg6[%c0_20, %c0_21], %59 {strides = array<i32>} : memref<1x1xf32, #tpu.memory_space<vmem>>, vector<1x1xf32>,
    %c0_i32_22 = arith.constant 0 : i32
    %61 = arith.cmpi eq, %arg1, %c0_i32_22 : i32
    %62 = arith.extui %61 : i1 to i32
    %c0_i32_23 = arith.constant 0 : i32
    %63 = arith.cmpi ne, %62, %c0_i32_23 : i32
    scf.if %63 {
      %c0_24 = arith.constant 0 : index
      %c0_25 = arith.constant 0 : index
      %64 = vector.load %arg6[%c0_24, %c0_25] : memref<1x1xf32, #tpu.memory_space<vmem>>, vector<1x1xf32>
      %cst_26 = arith.constant 1.250000e-01 : f32
      %65 = vector.broadcast %cst_26 : f32 to vector<1x1xf32>
      %66 = arith.mulf %64, %65 : vector<1x1xf32>
      %67 = vector.shape_cast %66 : vector<1x1xf32> to vector<1x1xf32>
      %68 = vector.broadcast %67 : vector<1x1xf32> to vector<8x128xf32>
      %c0_27 = arith.constant 0 : index
      %c0_28 = arith.constant 0 : index
      %69 = vector.load %arg4[%c0_27, %c0_28] : memref<8x128xf32, #tpu.memory_space<vmem>>, vector<8x128xf32>
      tpu.vector_store %arg4[%c0_27, %c0_28], %68 {strides = array<i32>} : memref<8x128xf32, #tpu.memory_space<vmem>>, vector<8x128xf32>,
    } else {
    }
    return
  }
  func.func @transform_0(%arg0: i32, %arg1: i32) -> (i32, i32) {
    %c1_i32 = arith.constant 1 : i32
    %0 = arith.muli %arg0, %c1_i32 : i32
    %1 = arith.addi %0, %arg1 : i32
    %c0_i32 = arith.constant 0 : i32
    %c0_i32_0 = arith.constant 0 : i32
    return %1, %c0_i32 : i32, i32
  }
  func.func @transform_1(%arg0: i32, %arg1: i32) -> (i32, i32) {
    %c1_i32 = arith.constant 1 : i32
    %0 = arith.muli %arg0, %c1_i32 : i32
    %1 = arith.addi %0, %arg1 : i32
    %c0_i32 = arith.constant 0 : i32
    %c0_i32_0 = arith.constant 0 : i32
    return %1, %c0_i32 : i32, i32
  }
  func.func @transform_2(%arg0: i32, %arg1: i32) -> (i32, i32) {
    %c0_i32 = arith.constant 0 : i32
    %c0_i32_0 = arith.constant 0 : i32
    return %arg0, %c0_i32 : i32, i32
  }
}

</mosaic_0001>

<bundles_post_ra>
// kernel: tpu_custom_call.1
= control target key start
LH: loop header
LB: loop body
LE: loop exit
PB: predicated region body
PF: predicated region fallthrough
CT: control target
= control target key end

     0   :  { %7 = vsyncpa [#allocation5], 0  ;;  %s302_s0 = inlined_call_operand.hbm [shape: f32[8,32], index: 0, kind: input, shape index: {}]   ;;  %s303_s1 = inlined_call_operand.hbm [shape: s32[8,1], index: 1, kind: input, shape index: {}]   ;;  %s304_s2 = inlined_call_operand.hbm [shape: f32[8,128], index: 2, kind: output, shape index: {}]  }
   0x1   :  { %8 = vsyncpa [#allocation8], 0 }
   0x2   :  { %9 = vsyncpa [#allocation6], 0  ;;  %s241_s9 = smov [#allocation4]   ;;  %s242_s11 = smov [#allocation7]  }
   0x3   :  { %s19_s10 = sshll.u32 %s241_s9, 4  ;;  %s32_s12 = sshll.u32 %s242_s11, 4  ;;  %s20_s10 = int_to_ptr.vmem [resolvable:$true] %s19_s10  ;;  %s33_s12 = int_to_ptr.vmem [resolvable:$true] %s32_s12 }
   0x4   :  { %s169_s15 = scalar_lea.hbm %s302_s0, 128 }
   0x5   :  { %p170_p0 = scmp.ne.s32.totalorder %s302_s0, %s169_s15  ;;  %p173_p1 = scmp.lt.u32.totalorder %s169_s15, %s302_s0 }
   0x7   :  { %p175_p2 = pnand %p173_p1, %p170_p0 }
   0x9   :  { %178 = shalt.err (!%p175_p2)
}
   0xa   :  { %s179_s20 = scalar_lea.vmem %s20_s10, 128  ;;  %p184_p4 = scmp.lt.s32.totalorder %s20_s10, %s20_s10 }
   0xb   :  { %p180_p3 = scmp.ne.s32.totalorder %s20_s10, %s179_s20  ;;  %p185_p5 = scmp.lt.s32.totalorder %s179_s20, %s179_s20 }
   0xd   :  { %p186_p6 = por %p185_p5, %p184_p4 }
   0xf   :  { %p187_p7 = pnand %p186_p6, %p180_p3 }
  0x11   :  { %190 = shalt.err (!%p187_p7)
}
  0x12   :  { %22 = dma.hbm_to_vmem [thread:$0]  %s302_s0, 128, %s20_s10, [#allocation5]  }
  0x13   :  { %s191_s25 = scalar_lea.hbm %s303_s1, 128 }
  0x14   :  { %p192_p8 = scmp.ne.s32.totalorder %s303_s1, %s191_s25  ;;  %p195_p9 = scmp.lt.u32.totalorder %s191_s25, %s303_s1 }
  0x16   :  { %p197_p10 = pnand %p195_p9, %p192_p8 }
  0x18   :  { %200 = shalt.err (!%p197_p10)
}
  0x19   :  { %s201_s30 = scalar_lea.vmem %s33_s12, 128  ;;  %p206_p12 = scmp.lt.s32.totalorder %s33_s12, %s33_s12 }
  0x1a   :  { %p202_p11 = scmp.ne.s32.totalorder %s33_s12, %s201_s30  ;;  %p207_p13 = scmp.lt.s32.totalorder %s201_s30, %s201_s30 }
  0x1c   :  { %p208_p0 = por %p207_p13, %p206_p12 }
  0x1e   :  { %p209_p1 = pnand %p208_p0, %p202_p11 }
  0x20   :  { %212 = shalt.err (!%p209_p1)
}
  0x21   :  { %35 = dma.hbm_to_vmem [thread:$0]  %s303_s1, 128, %s33_s12, [#allocation8]  }
  0x22   :  { %235 = dma.done.wait [#allocation5], 128  }
  0x23   :  { %236 = vsyncadd [#allocation5], 4294967168 }
  0x24   :  { %237 = dma.done.wait [#allocation8], 128  }
  0x25   :  { %238 = vsyncadd [#allocation8], 4294967168  ;;  %v48_v0 = vlaneseq  ;;  %vm50_vm0 = vcmask 253952   ;;  %v243_v1 = vmov 0   ;;  %v54_v3 = vld [vmem:[#allocation4] sm:$0xff]  ;;  %vm66_vm1 = vcmask 261120  }
  0x26   :  { %159 = vset.pattern.permute.xlu0 %v243_v1  ;;  %160 = vset.pattern.permute.xlu1 %v243_v1  ;;  %v65_v4 = vmul.f32 %v54_v3, %v54_v3  ;;  %v55_v6 = vld [vmem:[#allocation7] sm:$0xff]  ;;  %vm105_vm3 = vcmask 7168   ;;  %vm52_vm4 = vcmask 0   ;;  %v244_v33 = vmov 0.0   ;;  %s245_s4 = smov [#allocation9]  }
  0x27   :  { %v49_v2 = vand.u32 127, %v48_v0  ;;  %53 = vst.msk [vmem:[#allocation3] sm:$0x1] %vm52_vm4, %v244_v33  ;;  %v127_v44 = vshrl.u32 %v48_v0, 7  ;;  %s141_s5 = sshll.u32 %s245_s4, 4  ;;  %s142_s5 = int_to_ptr.vmem [resolvable:$true] %s141_s5 }
  0x28   :  { %v67_v5 = vsel %vm66_vm1, %v65_v4, 0.0  ;;  %s213_s6 = scalar_lea.vmem %s142_s5, 128  ;;  %p218_p3 = scmp.lt.s32.totalorder %s142_s5, %s142_s5 }
  0x29   :  { %51 = vst.msk [vmem:[#allocation2] sm:$0x1] %vm50_vm0, %v49_v2  ;;  %68 = vadd.xlane.f32.xlu0 %v67_v5  ;;  %v128_v45 = vsub.s32 0, %v127_v44  ;;  %p214_p2 = scmp.ne.s32.totalorder %s142_s5, %s213_s6  ;;  %p219_p4 = scmp.lt.s32.totalorder %s213_s6, %s213_s6 }
  0x2b   :  { %p220_p5 = por %p219_p4, %p218_p3 }
  0x2d   :  { %p221_p6 = pnand %p220_p5, %p214_p2 }
  0x2e   :  { %v104_v41 = vld [vmem:[#allocation3] sm:$0x1] }
  0x30   :  { %v151_v13 = vld [vmem:[#allocation2] ss:$0 sm:$0xff] }
  0x3f   :  { %79 = vperm.xlu0 %159, %v55_v6  }
  0xb6   :  { %v69_v7 = vpop.xlane.xlu0 %68 }
  0xb7   :  { %v70_v8 = vmax.f32 %v69_v7, 1e-24 }
  0xb9   :  { %161 = vrsqrt.f32 %v70_v8 }
  0xbe   :  { %v80_v12 = vpop.permute.xlu0 %79 }
  0xbf   :  { %vm81_vm2 = vcmp.eq.s32.totalorder %v151_v13, %v80_v12 }
  0xc3   :  { %v162_v9 = vpop.eup %161 }
  0xc4   :  { %v72_v10 = vmul.f32 %v162_v9, %v54_v3 }
  0xc6   :  { %v87_v11 = vmul.f32 1.442695, %v72_v10  ;;  %v82_v16 = vsel %vm81_vm2, %v72_v10, 0.0 }
  0xc7   :  { %v83_v17 = vsel %vm66_vm1, %v82_v16, 0.0 }
  0xc8   :  { %163 = vpow2.f32 %v87_v11 }
  0xd2   :  { %v164_v14 = vpop.eup %163 }
  0xd3   :  { %v89_v15 = vsel %vm66_vm1, %v164_v14, 0.0 }
  0xd4   :  { %90 = vadd.xlane.f32.xlu1 %v89_v15 }
  0xd8   :  { %84 = vadd.xlane.f32.xlu1 %v83_v17 }
 0x161   :  { %v91_v18 = vpop.xlane.xlu1 %90 }
 0x162   :  { %165 = vlog2.f32 %v91_v18 }
 0x165   :  { %v85_v21 = vpop.xlane.xlu1 %84 }
 0x166   :  { %v86_v29 = vsub.f32 1.0, %v85_v21 }
 0x16c   :  { %v166_v19 = vpop.eup %165 }
 0x16d   :  { %v93_v20 = vmul.f32 0.6931472, %v166_v19 }
 0x16f   :  { %v94_v22 = vsub.f32 %v93_v20, %v85_v21 }
 0x171   :  { %v95_v23 = vsub.f32 0.0, %v94_v22 }
 0x173   :  { %v96_v24 = vmul.f32 1.442695, %v95_v23 }
 0x175   :  { %167 = vpow2.f32 %v96_v24 }
 0x17f   :  { %v168_v25 = vpop.eup %167 }
 0x180   :  { %v98_v26 = vsub.f32 1.0, %v168_v25 }
 0x182   :  { %v99_v27 = vmul.f32 %v98_v26, %v98_v26 }
 0x184   :  { %v100_v28 = vmul.f32 %v99_v27, %v94_v22 }
 0x186   :  { %v101_v30 = vmul.f32 0.1, %v100_v28 }
 0x188   :  { %v102_v31 = vadd.f32 %v101_v30, %v86_v29 }
 0x18a   :  { %v106_v32 = vsel %vm105_vm3, %v102_v31, 0.0 }
 0x18b   :  { %107 = vadd.xlane.f32.xlu1 %v106_v32 }
 0x218   :  { %v108_v34 = vpop.xlane.xlu1 %107 }
 0x219   :  { %v109_v35 = vrot.slane %v108_v34, 4 }
 0x21b   :  { %v110_v36 = vadd.f32 %v109_v35, %v108_v34 }
 0x21d   :  { %v111_v37 = vrot.slane %v110_v36, 2 }
 0x21f   :  { %v112_v38 = vadd.f32 %v111_v37, %v110_v36 }
 0x221   :  { %v113_v39 = vrot.slane %v112_v38, 1 }
 0x223   :  { %v114_v40 = vadd.f32 %v113_v39, %v112_v38 }
 0x225   :  { %152 = vpush %v114_v40 }
 0x256   :  { %s153_s1 = spop %152 }
 0x257   :  { %v116_v42 = vstv %s153_s1 }
 0x258   :  { %v117_v43 = vadd.f32 %v116_v42, %v104_v41 }
 0x25a   :  { %119 = vst.msk [vmem:[#allocation3] sm:$0x1] %vm52_vm4, %v117_v43 }
 0x261   :  { %v123_v46 = vld [vmem:[#allocation3] sm:$0x1] }
 0x262   :  { %v124_v47 = vmul.f32 0.125, %v123_v46 }
 0x264   :  { %v129_v48 = vrot.slane %v124_v47, %v128_v45 }
 0x266   :  { %131 = vperm.xlu1 %160, %v129_v48  }
 0x2e5   :  { %v132_v49 = vpop.permute.xlu1 %131 }
 0x2e6   :  { %134 = vst [vmem:[#allocation9] sm:$0xff] %v132_v49 }
 0x2e7   :  { %224 = shalt.err (!%p221_p6)
}
 0x2e8   :  { %s225_s9 = scalar_lea.hbm %s304_s2, 128 }
 0x2e9   :  { %p226_p7 = scmp.ne.s32.totalorder %s304_s2, %s225_s9  ;;  %p229_p8 = scmp.lt.u32.totalorder %s225_s9, %s304_s2 }
 0x2eb   :  { %p231_p9 = pnand %p229_p8, %p226_p7 }
 0x2ed   :  { %234 = shalt.err (!%p231_p9)
}
 0x2ee   :  { %144 = dma.vmem_to_hbm [thread:$0]  %s142_s5, 128, %s304_s2, [#allocation6]  }
 0x2ef   :  { %239 = dma.done.wait [#allocation6], 128  }
 0x2f0   :  { %240 = vsyncadd [#allocation6], 4294967168 }
 0x2f1   :  { %148 = vsyncpa [#allocation5], 1 }
 0x2f2   :  { %149 = vsyncpa [#allocation8], 1 }
 0x2f3   :  { %150 = vsyncpa [#allocation6], 1 }

</bundles_post_ra>
